<compile_context>
chip_gen: v7x
topology: tpu7x:2x2x1
jax: 0.10.0
libtpu: 0.0.40
codegen_flags: <defaults>
</compile_context>

<pallas_src>
import jax
import jax.numpy as jnp
from jax.experimental import pallas as pl
from jax.experimental.pallas import tpu as pltpu


def policy_kernel(x_ref, w1_ref, b1_ref, w2_ref, b2_ref, o_ref):
    # x_ref:  (TB, S)  flattened observation tile (compute dtype, e.g. bf16)
    # w1_ref: (S, H)   fc1 weight (transposed vs torch),  b1_ref: (1, H) f32
    # w2_ref: (H, A)   fc3 weight (transposed vs torch),  b2_ref: (1, A) f32
    # o_ref:  (TB, A)  softmax probabilities, f32

    # fc1 (+bias) with f32 accumulation, then ReLU
    h = jnp.dot(x_ref[...], w1_ref[...], preferred_element_type=jnp.float32)
    h = jnp.maximum(h + b1_ref[...], 0.0)

    # TODO(synk): nn.Dropout(p=0.2) is identity in eval mode; training-mode
    # random masking (pltpu.prng_random_bits) is intentionally not implemented.

    # fc3 (+bias), f32 accumulation
    logits = jnp.dot(h.astype(w2_ref.dtype), w2_ref[...],
                     preferred_element_type=jnp.float32) + b2_ref[...]

    # Numerically stable softmax over the action axis.  Exact division (not the
    # approximate reciprocal) so rows sum to 1 to f32 precision.
    m = jnp.max(logits, axis=-1, keepdims=True)
    e = jnp.exp(logits - m)
    o_ref[...] = e / jnp.sum(e, axis=-1, keepdims=True)


def _round_up(x, m):
    return ((x + m - 1) // m) * m


def _choose_batch_tile(B, cap=1024):
    """Batch tile: multiple of 8, <= cap.  Guarantees >= 2 grid steps when
    B >= 16 (so v7x megacore sharding has work for both cores) and evens out
    tiles when B > cap so ragged-tail waste stays well under one tile."""
    n_tiles = pl.cdiv(B, cap)
    if B >= 16:
        n_tiles = max(n_tiles, 2)
    tb = _round_up(pl.cdiv(B, n_tiles), 8)
    return min(tb, _round_up(B, 8))


def _reference_forward(x2d, w1, b1, w2, b2):
    """Plain-jnp f32 forward: also used as the small-batch fast path."""
    x = x2d.astype(jnp.float32)
    h = jnp.maximum(
        jnp.dot(x, w1.astype(jnp.float32), precision=jax.lax.Precision.HIGHEST) + b1, 0.0)
    logits = jnp.dot(h, w2.astype(jnp.float32),
                     precision=jax.lax.Precision.HIGHEST) + b2
    return jax.nn.softmax(logits, axis=-1)


def policy_forward(x, w1, b1, w2, b2, *, compute_dtype=jnp.bfloat16,
                   min_pallas_batch=64):
    """x: (B, rows, cols, 2) or already-flat (B, S). Returns (B, A) f32 softmax probs."""
    B = x.shape[0]
    x2d = jnp.reshape(x, (B, -1))          # torch x.view(B, -1); free for contiguous x

    if B < min_pallas_batch:
        # Fixed pallas_call dispatch + pipeline prologue/epilogue dwarfs the few
        # nanoseconds of compute at tiny batch on every TPU generation.
        return _reference_forward(x2d, w1, b1, w2, b2)

    S, H, A = x2d.shape[1], w1.shape[1], w2.shape[1]
    TB = _choose_batch_tile(B)
    grid = (pl.cdiv(B, TB),)               # ragged last block handled by Pallas

    # Stream activations/weights in the compute dtype (bf16 halves HBM traffic on
    # the x stream and is MXU-native); biases/accumulation/softmax stay f32.
    x2d = x2d if x2d.dtype == compute_dtype else x2d.astype(compute_dtype)
    w1c = w1.astype(compute_dtype)
    w2c = w2.astype(compute_dtype)
    b1f = b1.astype(jnp.float32)
    b2f = b2.astype(jnp.float32)

    return pl.pallas_call(
        policy_kernel,
        out_shape=jax.ShapeDtypeStruct((B, A), jnp.float32),
        grid=grid,
        in_specs=[
            pl.BlockSpec((TB, S), lambda i: (i, 0)),   # activations: batch-tiled stream
            pl.BlockSpec((S, H), lambda i: (0, 0)),    # weights/biases: VMEM-resident
            pl.BlockSpec((1, H), lambda i: (0, 0)),
            pl.BlockSpec((H, A), lambda i: (0, 0)),
            pl.BlockSpec((1, A), lambda i: (0, 0)),
        ],
        # Output stays (TB, A=3): output bytes are ~10% of input bytes here, so
        # lane-padding A to 128 would only inflate HBM write traffic.
        out_specs=pl.BlockSpec((TB, A), lambda i: (i, 0)),
        compiler_params=pltpu.CompilerParams(
            dimension_semantics=("parallel",),   # v7x: shard batch tiles across 2 TCs
        ),
    )(x2d, w1c, b1f, w2c, b2f)


def init_params(key, state_size, hidden_size, action_size):
    """Deterministic init mimicking torch.nn.Linear default (uniform +/- 1/sqrt(fan_in))."""
    k1, k2, k3, k4 = jax.random.split(key, 4)
    bound1 = 1.0 / jnp.sqrt(float(state_size))
    bound2 = 1.0 / jnp.sqrt(float(hidden_size))
    w1 = jax.random.uniform(k1, (state_size, hidden_size), jnp.float32, -bound1, bound1)
    b1 = jax.random.uniform(k2, (1, hidden_size), jnp.float32, -bound1, bound1)
    w2 = jax.random.uniform(k3, (hidden_size, action_size), jnp.float32, -bound2, bound2)
    b2 = jax.random.uniform(k4, (1, action_size), jnp.float32, -bound2, bound2)
    return w1, b1, w2, b2


if __name__ == "__main__":
    # hyp: observation_type='pixel', rows=4, columns=4 -> state_size = 4*4*2 = 32
    rows, columns, planes = 4, 4, 2
    state_size = rows * columns * planes
    hidden_size = 32
    action_size = 3

    key = jax.random.PRNGKey(0)
    kx1, kx2, kp = jax.random.split(key, 3)
    w1, b1, w2, b2 = init_params(kp, state_size, hidden_size, action_size)

    # --- 1) tiny batch (B=2): Pallas path forced, exact f32 streaming ---
    x_small = jax.random.normal(kx1, (2, rows, columns, planes), jnp.float32)
    probs_small = policy_forward(x_small, w1, b1, w2, b2,
                                 compute_dtype=jnp.float32, min_pallas_batch=0)
    probs_small = jax.block_until_ready(probs_small)
    ref_small = _reference_forward(jnp.reshape(x_small, (2, -1)), w1, b1, w2, b2)
    assert probs_small.shape == (2, action_size)
    assert bool(jnp.all(jnp.abs(jnp.sum(probs_small, axis=-1) - 1.0) < 1e-5))
    assert bool(jnp.all(jnp.abs(probs_small - ref_small) < 1e-3))

    # --- 2) larger batch (B=200): multi-step grid + ragged last tile + bf16 stream ---
    B = 200
    x_big = jax.random.normal(kx2, (B, rows, columns, planes), jnp.float32)
    probs_big = jax.block_until_ready(policy_forward(x_big, w1, b1, w2, b2))
    ref_big = _reference_forward(jnp.reshape(x_big, (B, -1)), w1, b1, w2, b2)
    assert probs_big.shape == (B, action_size)
    assert bool(jnp.all(jnp.abs(jnp.sum(probs_big, axis=-1) - 1.0) < 1e-5))
    assert bool(jnp.all(jnp.abs(probs_big - ref_big) < 2e-2))   # bf16 activation stream

    # --- 3) tiny batch through the default small-batch fast path (pure jnp) ---
    probs_fast = jax.block_until_ready(policy_forward(x_small, w1, b1, w2, b2))
    assert probs_fast.shape == (2, action_size)
    assert bool(jnp.all(jnp.abs(probs_fast - probs_small) < 1e-3))

    print("KERNEL_OK")
</pallas_src>

<mosaic_0001>
module attributes {stable_mosaic.version = 11 : i64} {
  func.func @policy_kernel(%arg0: i32, %arg1: memref<8x32xf32, #tpu.memory_space<vmem>>, %arg2: memref<32x32xf32, #tpu.memory_space<vmem>>, %arg3: memref<1x32xf32, #tpu.memory_space<vmem>>, %arg4: memref<32x3xf32, #tpu.memory_space<vmem>>, %arg5: memref<1x3xf32, #tpu.memory_space<vmem>>, %arg6: memref<8x3xf32, #tpu.memory_space<vmem>>) attributes {dimension_semantics = [#tpu.dimension_semantics<parallel>], iteration_bounds = array<i64: 1>, scalar_prefetch = 0 : i64, scratch_operands = 0 : i64, tpu.core_type = #tpu.core_type<tc>, window_params = [{transform_indices = @transform_0, window_bounds = array<i64: 8, 32>}, {pipeline_mode = #tpu.pipeline_mode<synchronous>, transform_indices = @transform_1, window_bounds = array<i64: 32, 32>}, {pipeline_mode = #tpu.pipeline_mode<synchronous>, transform_indices = @transform_2, window_bounds = array<i64: 1, 32>}, {pipeline_mode = #tpu.pipeline_mode<synchronous>, transform_indices = @transform_3, window_bounds = array<i64: 32, 3>}, {pipeline_mode = #tpu.pipeline_mode<synchronous>, transform_indices = @transform_4, window_bounds = array<i64: 1, 3>}, {transform_indices = @transform_5, window_bounds = array<i64: 8, 3>}]} {
    %c0 = arith.constant 0 : index
    %c0_0 = arith.constant 0 : index
    %0 = vector.load %arg1[%c0, %c0_0] : memref<8x32xf32, #tpu.memory_space<vmem>>, vector<8x32xf32>
    %c0_1 = arith.constant 0 : index
    %c0_2 = arith.constant 0 : index
    %1 = vector.load %arg2[%c0_1, %c0_2] : memref<32x32xf32, #tpu.memory_space<vmem>>, vector<32x32xf32>
    %cst = arith.constant dense<0.000000e+00> : vector<8x32xf32>
    %2 = tpu.matmul %0, %1, %cst {dimension_numbers = #tpu.dot_dimension_numbers<[1], [0], [0], [1], [0, 0, 1, 1], [], []>} : vector<8x32xf32>, vector<32x32xf32>, vector<8x32xf32> -> vector<8x32xf32>
    %c0_3 = arith.constant 0 : index
    %c0_4 = arith.constant 0 : index
    %3 = vector.load %arg3[%c0_3, %c0_4] : memref<1x32xf32, #tpu.memory_space<vmem>>, vector<1x32xf32>
    %4 = vector.broadcast %3 : vector<1x32xf32> to vector<8x32xf32>
    %5 = arith.addf %2, %4 : vector<8x32xf32>
    %cst_5 = arith.constant 0.000000e+00 : f32
    %6 = vector.broadcast %cst_5 : f32 to vector<8x32xf32>
    %7 = arith.maximumf %5, %6 : vector<8x32xf32>
    %c0_6 = arith.constant 0 : index
    %c0_7 = arith.constant 0 : index
    %8 = vector.load %arg4[%c0_6, %c0_7] : memref<32x3xf32, #tpu.memory_space<vmem>>, vector<32x3xf32>
    %cst_8 = arith.constant dense<0.000000e+00> : vector<8x3xf32>
    %9 = tpu.matmul %7, %8, %cst_8 {dimension_numbers = #tpu.dot_dimension_numbers<[1], [0], [0], [1], [0, 0, 1, 1], [], []>} : vector<8x32xf32>, vector<32x3xf32>, vector<8x3xf32> -> vector<8x3xf32>
    %c0_9 = arith.constant 0 : index
    %c0_10 = arith.constant 0 : index
    %10 = vector.load %arg5[%c0_9, %c0_10] : memref<1x3xf32, #tpu.memory_space<vmem>>, vector<1x3xf32>
    %11 = vector.broadcast %10 : vector<1x3xf32> to vector<8x3xf32>
    %12 = arith.addf %9, %11 : vector<8x3xf32>
    %cst_11 = arith.constant dense<0xFF800000> : vector<8xf32>
    %13 = vector.multi_reduction <maximumf>, %12, %cst_11 [1] : vector<8x3xf32> to vector<8xf32>
    %14 = vector.shape_cast %13 : vector<8xf32> to vector<8x1xf32>
    %15 = vector.broadcast %14 : vector<8x1xf32> to vector<8x3xf32>
    %16 = arith.subf %12, %15 : vector<8x3xf32>
    %17 = math.exp %16 : vector<8x3xf32>
    %cst_12 = arith.constant dense<0.000000e+00> : vector<8xf32>
    %18 = vector.multi_reduction <add>, %17, %cst_12 [1] : vector<8x3xf32> to vector<8xf32>
    %19 = vector.shape_cast %18 : vector<8xf32> to vector<8x1xf32>
    %20 = vector.broadcast %19 : vector<8x1xf32> to vector<8x3xf32>
    %21 = arith.divf %17, %20 : vector<8x3xf32>
    %c0_13 = arith.constant 0 : index
    %c0_14 = arith.constant 0 : index
    %22 = vector.load %arg6[%c0_13, %c0_14] : memref<8x3xf32, #tpu.memory_space<vmem>>, vector<8x3xf32>
    tpu.vector_store %arg6[%c0_13, %c0_14], %21 {strides = array<i32>} : memref<8x3xf32, #tpu.memory_space<vmem>>, vector<8x3xf32>,
    return
  }
  func.func @transform_0(%arg0: i32) -> (i32, i32) {
    %c0_i32 = arith.constant 0 : i32
    %c0_i32_0 = arith.constant 0 : i32
    return %arg0, %c0_i32 : i32, i32
  }
  func.func @transform_1(%arg0: i32) -> (i32, i32) {
    %c0_i32 = arith.constant 0 : i32
    %c0_i32_0 = arith.constant 0 : i32
    %c0_i32_1 = arith.constant 0 : i32
    return %c0_i32, %c0_i32_0 : i32, i32
  }
  func.func @transform_2(%arg0: i32) -> (i32, i32) {
    %c0_i32 = arith.constant 0 : i32
    %c0_i32_0 = arith.constant 0 : i32
    %c0_i32_1 = arith.constant 0 : i32
    return %c0_i32, %c0_i32_0 : i32, i32
  }
  func.func @transform_3(%arg0: i32) -> (i32, i32) {
    %c0_i32 = arith.constant 0 : i32
    %c0_i32_0 = arith.constant 0 : i32
    %c0_i32_1 = arith.constant 0 : i32
    return %c0_i32, %c0_i32_0 : i32, i32
  }
  func.func @transform_4(%arg0: i32) -> (i32, i32) {
    %c0_i32 = arith.constant 0 : i32
    %c0_i32_0 = arith.constant 0 : i32
    %c0_i32_1 = arith.constant 0 : i32
    return %c0_i32, %c0_i32_0 : i32, i32
  }
  func.func @transform_5(%arg0: i32) -> (i32, i32) {
    %c0_i32 = arith.constant 0 : i32
    %c0_i32_0 = arith.constant 0 : i32
    return %arg0, %c0_i32 : i32, i32
  }
}

</mosaic_0001>

<bundles_post_ra>
// kernel: tpu_custom_call.1
= control target key start
LH: loop header
LB: loop body
LE: loop exit
PB: predicated region body
PF: predicated region fallthrough
CT: control target
= control target key end

     0   :  { %10 = vsyncpa [#allocation3], 0  ;;  %v303_v2 = vmov 0.0|0.0   ;;  %vm304_vm0 = vmmov 0   ;;  %v305_v6 = vmov 0.0   ;;  %vm33_vm1 = vcmask 261120   ;;  %s387_s0 = inlined_call_operand.vmem [shape: f32[2,32], index: 0, kind: input, shape index: {}]   ;;  %s388_s1 = inlined_call_operand.vmem [shape: f32[32,32], index: 1, kind: input, shape index: {}]   ;;  %s389_s2 = inlined_call_operand.vmem [shape: f32[1,32], index: 2, kind: input, shape index: {}]   ;;  %s390_s3 = inlined_call_operand.vmem [shape: f32[32,3], index: 3, kind: input, shape index: {}]   ;;  %s391_s4 = inlined_call_operand.vmem [shape: f32[1,3], index: 4, kind: input, shape index: {}]   ;;  %s392_s5 = inlined_call_operand.hbm [shape: f32[2,3], index: 5, kind: output, shape index: {}]  }
   0x1   :  { %v22_v0 = vld [vmem:[%s388_s1] sm:$0xff]  ;;  %v23_v1 = vld [vmem:[%s388_s1 + $0x8] sm:$0xff]  ;;  %257 = vmatprep.subr.bf16.mxu0 %v303_v2  ;;  %v24_v4 = vld [vmem:[%s388_s1 + $0x10] sm:$0xff]  ;;  %263 = vmatprep.subr.bf16.mxu1 %v303_v2  ;;  %vm192_vm2 = vcmask 23552  }
   0x2   :  { %v258_v3 = vpack.c.bf16 %v23_v1, %v22_v0  ;;  %v25_v5 = vld [vmem:[%s388_s1 + $0x18] sm:$0xff]  ;;  %243 = vmatprep.mubr.msk.f32.mxu0 %vm304_vm0, %v305_v6  ;;  %v108_v7 = vld [vmem:[%s390_s3] sm:$0xff]  ;;  %v109_v8 = vld [vmem:[%s390_s3 + $0x8] sm:$0xff]  ;;  %254 = vmatprep.mubr.msk.f32.mxu1 %vm304_vm0, %v305_v6 }
   0x3   :  { %v261_v9 = vpack.c.bf16 %v25_v5, %v24_v4  ;;  %v264_v10 = vpack.c.bf16 %v109_v8, %v108_v7  ;;  %v21_v11 = vld [vmem:[%s387_s0] sm:$0xff]  ;;  %v110_v12 = vld [vmem:[%s390_s3 + $0x10] sm:$0xff]  ;;  %v111_v13 = vld [vmem:[%s390_s3 + $0x18] sm:$0xff] }
   0x4   :  { %259 = vmatpush3.bf16.msra.mxu0 %v258_v3  ;;  %v267_v14 = vpack.c.bf16 %v111_v13, %v110_v12  ;;  %v221_v15 = vld [vmem:[%s389_s2] ss:$0 sm:$0xff] }
   0x5   :  { %260 = vmatprep.subr.bf16.mxu0 %v303_v2  ;;  %265 = vmatpush3.bf16.msra.mxu1 %v264_v10  ;;  %v223_v20 = vld [vmem:[%s391_s4] ss:$0 sm:$0xff] }
   0x6   :  { %266 = vmatprep.subr.bf16.mxu1 %v303_v2 }
   0x8   :  { %262 = vmatpush3.bf16.msra.mxu0 %v261_v9 }
   0x9   :  { %268 = vmatpush3.bf16.msra.mxu1 %v267_v14 }
   0xb   :  { %244 = vmatmul.mubr.msk.f32.vlgmr.msra.gmra.mrb[0].mxu0 %vm33_vm1, %v21_v11 }
  0xde   :  { %v103_v16 = vpop.f32.mrb[0].mxu0 }
  0xdf   :  { %v104_v17 = vadd.f32 %v221_v15, %v103_v16  ;;  %v245_v18 = vpop.f32.mrb[1].mxu0 }
  0xe1   :  { %v107_v19 = vmax.f32 %v104_v17, 0.0 }
  0xe3   :  { %255 = vmatmul.mubr.msk.f32.vlgmr.msra.gmra.mrb[0].mxu1 %vm33_vm1, %v107_v19 }
 0x1b6   :  { %v188_v21 = vpop.f32.mrb[0].mxu1 }
 0x1b7   :  { %v189_v22 = vadd.f32 %v223_v20, %v188_v21  ;;  %v256_v23 = vpop.f32.mrb[1].mxu1 }
 0x1b9   :  { %v193_v24 = vsel %vm192_vm2, %v189_v22, -inf }
 0x1ba   :  { %194 = vmax.xlane.f32.xlu0 %v193_v24 }
 0x247   :  { %v195_v25 = vpop.xlane.xlu0 %194 }
 0x248   :  { %v196_v26 = vsub.f32 %v189_v22, %v195_v25 }
 0x24a   :  { %v197_v27 = vmul.f32 1.442695, %v196_v26 }
 0x24c   :  { %275 = vpow2.f32 %v197_v27 }
 0x256   :  { %v276_v28 = vpop.eup %275 }
 0x257   :  { %v199_v29 = vsel %vm192_vm2, %v276_v28, 0.0 }
 0x258   :  { %200 = vadd.xlane.f32.xlu0 %v199_v29 }
 0x2e5   :  { %v201_v30 = vpop.xlane.xlu0 %200 }
 0x2e6   :  { %277 = vrcp.f32 %v201_v30 }
 0x2f0   :  { %v278_v31 = vpop.eup %277 }
 0x2f1   :  { %v203_v32 = vmul.f32 %v278_v31, %v276_v28 }
 0x2f3   :  { %204 = vst.msk [vmem:[#allocation2] sm:$0xff] %vm192_vm2, %v203_v32 }
 0x2f4   :  { %209 = vsyncadd [#allocation3], 96  ;;  %s306_s2 = smov [#allocation2]  }
 0x2f5   :  { %s210_s3 = sshll.u32 %s306_s2, 4  ;;  %s211_s3 = int_to_ptr.vmem [resolvable:$true] %s210_s3 }
 0x2f6   :  { %s279_s4 = scalar_lea.vmem %s211_s3, 32  ;;  %s283_s13 = scalar_lea.vmem %s211_s3, 128 }
 0x2f7   :  { %p280_p0 = scmp.ne.s32.totalorder %s211_s3, %s279_s4  ;;  %p284_p1 = scmp.lt.s32.totalorder %s211_s3, %s211_s3 }
 0x2f8   :  { %p285_p2 = scmp.lt.s32.totalorder %s283_s13, %s279_s4 }
 0x2fa   :  { %p286_p3 = por %p285_p2, %p284_p1 }
 0x2fc   :  { %p287_p4 = pnand %p286_p3, %p280_p0 }
 0x2fe   :  { %290 = shalt.err (!%p287_p4)
}
 0x2ff   :  { %s291_s16 = scalar_lea.hbm %s392_s5, 32 }
 0x300   :  { %p292_p5 = scmp.ne.s32.totalorder %s392_s5, %s291_s16  ;;  %p295_p6 = scmp.lt.u32.totalorder %s291_s16, %s392_s5 }
 0x302   :  { %p297_p7 = pnand %p295_p6, %p292_p5 }
 0x304   :  { %300 = shalt.err (!%p297_p7)
}
 0x305   :  { %s307_s21 = smov 32   ;;  %s308_s22 = smov 2  }
 0x306   :  { %216 = dma.vmem_to_hbm [thread:$0]  %s211_s3, 32, %s392_s5, [#allocation3], %s307_s21, %s307_s21, %s308_s22  }
 0x307   :  { %301 = dma.done.wait [#allocation3], 128  }
 0x308   :  { %302 = vsyncadd [#allocation3], 4294967168 }
 0x309   :  { %220 = vsyncpa [#allocation3], 1 }

</bundles_post_ra>
